<compile_context>
chip_gen: v7x
topology: tpu7x:2x2x1
jax: 0.10.0
libtpu: 0.0.40
codegen_flags: <defaults>
</compile_context>

<pallas_src>
import functools

import jax
import jax.numpy as jnp
from jax.experimental import pallas as pl
from jax.experimental.pallas import tpu as pltpu

bias_gain = 0.1
weight_gain = 1.0

_LANE = 128     # lane width (last dim)
_SUBLANE = 8    # f32 sublane (second-to-last dim)


def _round_up(n, m):
    return ((n + m - 1) // m) * m


def _cdiv(a, b):
    return (a + b - 1) // b


def _xavier_normal(key, fan_in, fan_out, gain):
    # Matches torch.nn.init.xavier_normal_: std = gain * sqrt(2/(fan_in+fan_out))
    std = gain * (2.0 / (fan_in + fan_out)) ** 0.5
    return std * jax.random.normal(key, (fan_in, fan_out), dtype=jnp.float32)


def _kaiming_uniform_linear(key, fan_in, fan_out):
    # PyTorch default nn.Linear init (map3): U(-1/sqrt(fan_in), 1/sqrt(fan_in)).
    bound = 1.0 / (fan_in ** 0.5)
    kw, kb = jax.random.split(key)
    w = jax.random.uniform(kw, (fan_in, fan_out), jnp.float32, -bound, bound)
    b = jax.random.uniform(kb, (1, fan_out), jnp.float32, -bound, bound)
    return w, b


def init_bs_params(key, input_size, hidden_size, output_size):
    k1, k2, k3 = jax.random.split(key, 3)
    w1 = _xavier_normal(k1, input_size, hidden_size, weight_gain)
    b1 = jnp.full((1, hidden_size), bias_gain, dtype=jnp.float32)
    w2 = _xavier_normal(k2, hidden_size, hidden_size, weight_gain)
    b2 = jnp.full((1, hidden_size), bias_gain, dtype=jnp.float32)
    w3, b3 = _kaiming_uniform_linear(k3, hidden_size, output_size)
    return {"w1": w1, "b1": b1, "w2": w2, "b2": b2, "w3": w3, "b3": b3}


def _pad2(a, rows, cols):
    return jnp.pad(a, ((0, rows - a.shape[0]), (0, cols - a.shape[1])))


def pad_bs_params(params, compute_dtype=jnp.bfloat16):
    """Pad ONLY the hidden feature dim to a lane-dense 128 multiple; cast
    weights to the MXU compute dtype (bf16). Input/output feature dims stay
    logical so x and the output are streamed at their logical widths.

    Padded weight columns/rows and padded bias entries are zero, so the padded
    network computes exactly the same values as the logical one on the real
    rows/columns (ReLU(0) = 0 feeds zeros forward).
    """
    input_size, hidden_size = params["w1"].shape
    output_size = params["w3"].shape[1]
    hid_p = _round_up(hidden_size, _LANE)
    padded = {
        "w1": _pad2(params["w1"], input_size, hid_p).astype(compute_dtype),
        "b1": _pad2(params["b1"], 1, hid_p),                                # f32
        "w2": _pad2(params["w2"], hid_p, hid_p).astype(compute_dtype),
        "b2": _pad2(params["b2"], 1, hid_p),                                # f32
        "w3": _pad2(params["w3"], hid_p, output_size).astype(compute_dtype),
        "b3": params["b3"],                                                 # f32
    }
    return padded, (input_size, hidden_size, output_size)


def _vmem_capacity_bytes():
    # Generation-aware per-core VMEM capacity; conservative fallback (v7x).
    try:
        return int(pltpu.get_tpu_info().vmem_capacity_bytes)
    except Exception:
        return 64 << 20


def bs_kernel(x_ref, w1_ref, b1_ref, w2_ref, b2_ref, w3_ref, b3_ref, o_ref):
    # map1 + bias + relu  (bf16 operands, f32 accumulation)
    x = x_ref[...].astype(w1_ref.dtype)
    h1 = jnp.dot(x, w1_ref[...], preferred_element_type=jnp.float32) + b1_ref[...]
    h1 = jnp.maximum(h1, 0.0)
    # map2 + bias + relu
    h2 = jnp.dot(h1.astype(w2_ref.dtype), w2_ref[...],
                 preferred_element_type=jnp.float32) + b2_ref[...]
    h2 = jnp.maximum(h2, 0.0)
    # map3 (no activation)
    out = jnp.dot(h2.astype(w3_ref.dtype), w3_ref[...],
                  preferred_element_type=jnp.float32) + b3_ref[...]
    o_ref[...] = out.astype(o_ref.dtype)


@functools.partial(jax.jit, static_argnames=("logical_dims", "block_batch"))
def bs_forward(x, padded_params, logical_dims, block_batch=1024):
    """x: [batch, input_size] f32. padded_params: output of pad_bs_params."""
    input_size, hidden_size, output_size = logical_dims
    batch = x.shape[0]

    w1, b1 = padded_params["w1"], padded_params["b1"]
    w2, b2 = padded_params["w2"], padded_params["b2"]
    w3, b3 = padded_params["w3"], padded_params["b3"]
    hid_p = w1.shape[1]

    # --- Balanced batch tiling -------------------------------------------
    num_tiles = max(1, _cdiv(batch, block_batch))
    # v7x megacore: make the parallel axis have >= 2 steps when batch allows,
    # so both TensorCores get work (no effect on v5e/v6e single-TC chips).
    if num_tiles == 1 and batch >= 2 * _SUBLANE:
        num_tiles = 2
    tb = _round_up(_cdiv(batch, num_tiles), _SUBLANE)
    grid_n = _cdiv(batch, tb)
    batch_p = grid_n * tb

    x_p = x if batch_p == batch else jnp.pad(x, ((0, batch_p - batch), (0, 0)))

    # --- VMEM budget (generation-aware) -----------------------------------
    w_item = jnp.dtype(w1.dtype).itemsize
    weight_bytes = (w1.size + w2.size + w3.size) * w_item \
                   + (b1.size + b2.size + b3.size) * 4
    act_tile_bytes = 4 * (tb * input_size + tb * output_size)       # x + out tile
    inter_bytes = 2 * tb * hid_p * 4                                # h1, h2
    # weights & activation tiles double-buffered by the pipeline, + headroom
    vmem_needed = 2 * (weight_bytes + act_tile_bytes) + inter_bytes
    vmem_limit = int(min(max(int(1.5 * vmem_needed), 4 << 20),
                         int(0.75 * _vmem_capacity_bytes())))

    # --- Cost estimate (scheduling hint only) ------------------------------
    flops = 2 * batch_p * (input_size * hid_p + hid_p * hid_p + hid_p * output_size)
    bytes_accessed = (batch_p * input_size * 4 + batch_p * output_size * 4
                      + weight_bytes)
    cost = pl.CostEstimate(flops=flops, transcendentals=0,
                           bytes_accessed=bytes_accessed)

    out_padded = pl.pallas_call(
        bs_kernel,
        out_shape=jax.ShapeDtypeStruct((batch_p, output_size), jnp.float32),
        grid=(grid_n,),
        in_specs=[
            # x: tiled along batch, logical (unpadded) feature width.
            pl.BlockSpec((tb, input_size), lambda i: (i, 0)),
            # Weights / biases: same block every step -> VMEM-resident.
            pl.BlockSpec((input_size, hid_p), lambda i: (0, 0)),
            pl.BlockSpec((1, hid_p), lambda i: (0, 0)),
            pl.BlockSpec((hid_p, hid_p), lambda i: (0, 0)),
            pl.BlockSpec((1, hid_p), lambda i: (0, 0)),
            pl.BlockSpec((hid_p, output_size), lambda i: (0, 0)),
            pl.BlockSpec((1, output_size), lambda i: (0, 0)),
        ],
        # Output keeps its logical feature width (no padded columns written).
        out_specs=pl.BlockSpec((tb, output_size), lambda i: (i, 0)),
        compiler_params=pltpu.CompilerParams(
            dimension_semantics=("parallel",),   # megacore sharding on v7x
            vmem_limit_bytes=vmem_limit,
        ),
        cost_estimate=cost,
    )(x_p, w1, b1, w2, b2, w3, b3)

    # Strip batch-row padding only when it was added.
    return out_padded if batch_p == batch else out_padded[:batch]


if __name__ == "__main__":
    key = jax.random.PRNGKey(0)
    k_param, k_x = jax.random.split(key)

    batch, input_size, hidden_size, output_size = 8, 16, 32, 8
    params = init_bs_params(k_param, input_size, hidden_size, output_size)
    padded_params, logical_dims = pad_bs_params(params)
    x = jax.random.normal(k_x, (batch, input_size), dtype=jnp.float32)

    out = bs_forward(x, padded_params, logical_dims)
    out = jax.block_until_ready(out)

    # Reference check in plain JAX (same math as the PyTorch forward),
    # using the UNPADDED f32 parameters. Kernel runs bf16 matmuls with f32
    # accumulation, so use a tolerance appropriate for bf16 operands.
    h1 = jnp.maximum(x @ params["w1"] + params["b1"], 0.0)
    h2 = jnp.maximum(h1 @ params["w2"] + params["b2"], 0.0)
    ref = h2 @ params["w3"] + params["b3"]
    assert out.shape == (batch, output_size)
    assert jnp.allclose(out, ref, atol=5e-2, rtol=5e-2), float(jnp.max(jnp.abs(out - ref)))

    print("KERNEL_OK")
</pallas_src>

<mosaic_0001>
module attributes {stable_mosaic.version = 11 : i64} {
  func.func @bs_kernel(%arg0: i32, %arg1: memref<8x16xf32, #tpu.memory_space<vmem>>, %arg2: memref<16x128xbf16, #tpu.memory_space<vmem>>, %arg3: memref<1x128xf32, #tpu.memory_space<vmem>>, %arg4: memref<128x128xbf16, #tpu.memory_space<vmem>>, %arg5: memref<1x128xf32, #tpu.memory_space<vmem>>, %arg6: memref<128x8xbf16, #tpu.memory_space<vmem>>, %arg7: memref<1x8xf32, #tpu.memory_space<vmem>>, %arg8: memref<8x8xf32, #tpu.memory_space<vmem>>) attributes {dimension_semantics = [#tpu.dimension_semantics<parallel>], iteration_bounds = array<i64: 1>, scalar_prefetch = 0 : i64, scratch_operands = 0 : i64, tpu.core_type = #tpu.core_type<tc>, window_params = [{transform_indices = @transform_0, window_bounds = array<i64: 8, 16>}, {pipeline_mode = #tpu.pipeline_mode<synchronous>, transform_indices = @transform_1, window_bounds = array<i64: 16, 128>}, {pipeline_mode = #tpu.pipeline_mode<synchronous>, transform_indices = @transform_2, window_bounds = array<i64: 1, 128>}, {pipeline_mode = #tpu.pipeline_mode<synchronous>, transform_indices = @transform_3, window_bounds = array<i64: 128, 128>}, {pipeline_mode = #tpu.pipeline_mode<synchronous>, transform_indices = @transform_4, window_bounds = array<i64: 1, 128>}, {pipeline_mode = #tpu.pipeline_mode<synchronous>, transform_indices = @transform_5, window_bounds = array<i64: 128, 8>}, {pipeline_mode = #tpu.pipeline_mode<synchronous>, transform_indices = @transform_6, window_bounds = array<i64: 1, 8>}, {transform_indices = @transform_7, window_bounds = array<i64: 8, 8>}]} {
    %c0 = arith.constant 0 : index
    %c0_0 = arith.constant 0 : index
    %0 = vector.load %arg1[%c0, %c0_0] : memref<8x16xf32, #tpu.memory_space<vmem>>, vector<8x16xf32>
    %1 = arith.truncf %0 : vector<8x16xf32> to vector<8x16xbf16>
    %c0_1 = arith.constant 0 : index
    %c0_2 = arith.constant 0 : index
    %2 = vector.load %arg2[%c0_1, %c0_2] : memref<16x128xbf16, #tpu.memory_space<vmem>>, vector<16x128xbf16>
    %cst = arith.constant dense<0.000000e+00> : vector<8x128xf32>
    %3 = tpu.matmul %1, %2, %cst {dimension_numbers = #tpu.dot_dimension_numbers<[1], [0], [0], [1], [0, 0, 1, 1], [], []>} : vector<8x16xbf16>, vector<16x128xbf16>, vector<8x128xf32> -> vector<8x128xf32>
    %c0_3 = arith.constant 0 : index
    %c0_4 = arith.constant 0 : index
    %4 = vector.load %arg3[%c0_3, %c0_4] : memref<1x128xf32, #tpu.memory_space<vmem>>, vector<1x128xf32>
    %5 = vector.broadcast %4 : vector<1x128xf32> to vector<8x128xf32>
    %6 = arith.addf %3, %5 : vector<8x128xf32>
    %cst_5 = arith.constant 0.000000e+00 : f32
    %7 = vector.broadcast %cst_5 : f32 to vector<8x128xf32>
    %8 = arith.maximumf %6, %7 : vector<8x128xf32>
    %9 = arith.truncf %8 : vector<8x128xf32> to vector<8x128xbf16>
    %c0_6 = arith.constant 0 : index
    %c0_7 = arith.constant 0 : index
    %10 = vector.load %arg4[%c0_6, %c0_7] : memref<128x128xbf16, #tpu.memory_space<vmem>>, vector<128x128xbf16>
    %cst_8 = arith.constant dense<0.000000e+00> : vector<8x128xf32>
    %11 = tpu.matmul %9, %10, %cst_8 {dimension_numbers = #tpu.dot_dimension_numbers<[1], [0], [0], [1], [0, 0, 1, 1], [], []>} : vector<8x128xbf16>, vector<128x128xbf16>, vector<8x128xf32> -> vector<8x128xf32>
    %c0_9 = arith.constant 0 : index
    %c0_10 = arith.constant 0 : index
    %12 = vector.load %arg5[%c0_9, %c0_10] : memref<1x128xf32, #tpu.memory_space<vmem>>, vector<1x128xf32>
    %13 = vector.broadcast %12 : vector<1x128xf32> to vector<8x128xf32>
    %14 = arith.addf %11, %13 : vector<8x128xf32>
    %cst_11 = arith.constant 0.000000e+00 : f32
    %15 = vector.broadcast %cst_11 : f32 to vector<8x128xf32>
    %16 = arith.maximumf %14, %15 : vector<8x128xf32>
    %17 = arith.truncf %16 : vector<8x128xf32> to vector<8x128xbf16>
    %c0_12 = arith.constant 0 : index
    %c0_13 = arith.constant 0 : index
    %18 = vector.load %arg6[%c0_12, %c0_13] : memref<128x8xbf16, #tpu.memory_space<vmem>>, vector<128x8xbf16>
    %cst_14 = arith.constant dense<0.000000e+00> : vector<8x8xf32>
    %19 = tpu.matmul %17, %18, %cst_14 {dimension_numbers = #tpu.dot_dimension_numbers<[1], [0], [0], [1], [0, 0, 1, 1], [], []>} : vector<8x128xbf16>, vector<128x8xbf16>, vector<8x8xf32> -> vector<8x8xf32>
    %c0_15 = arith.constant 0 : index
    %c0_16 = arith.constant 0 : index
    %20 = vector.load %arg7[%c0_15, %c0_16] : memref<1x8xf32, #tpu.memory_space<vmem>>, vector<1x8xf32>
    %21 = vector.broadcast %20 : vector<1x8xf32> to vector<8x8xf32>
    %22 = arith.addf %19, %21 : vector<8x8xf32>
    %c0_17 = arith.constant 0 : index
    %c0_18 = arith.constant 0 : index
    %23 = vector.load %arg8[%c0_17, %c0_18] : memref<8x8xf32, #tpu.memory_space<vmem>>, vector<8x8xf32>
    tpu.vector_store %arg8[%c0_17, %c0_18], %22 {strides = array<i32>} : memref<8x8xf32, #tpu.memory_space<vmem>>, vector<8x8xf32>,
    return
  }
  func.func @transform_0(%arg0: i32) -> (i32, i32) {
    %c0_i32 = arith.constant 0 : i32
    %c0_i32_0 = arith.constant 0 : i32
    return %arg0, %c0_i32 : i32, i32
  }
  func.func @transform_1(%arg0: i32) -> (i32, i32) {
    %c0_i32 = arith.constant 0 : i32
    %c0_i32_0 = arith.constant 0 : i32
    %c0_i32_1 = arith.constant 0 : i32
    return %c0_i32, %c0_i32_0 : i32, i32
  }
  func.func @transform_2(%arg0: i32) -> (i32, i32) {
    %c0_i32 = arith.constant 0 : i32
    %c0_i32_0 = arith.constant 0 : i32
    %c0_i32_1 = arith.constant 0 : i32
    return %c0_i32, %c0_i32_0 : i32, i32
  }
  func.func @transform_3(%arg0: i32) -> (i32, i32) {
    %c0_i32 = arith.constant 0 : i32
    %c0_i32_0 = arith.constant 0 : i32
    %c0_i32_1 = arith.constant 0 : i32
    return %c0_i32, %c0_i32_0 : i32, i32
  }
  func.func @transform_4(%arg0: i32) -> (i32, i32) {
    %c0_i32 = arith.constant 0 : i32
    %c0_i32_0 = arith.constant 0 : i32
    %c0_i32_1 = arith.constant 0 : i32
    return %c0_i32, %c0_i32_0 : i32, i32
  }
  func.func @transform_5(%arg0: i32) -> (i32, i32) {
    %c0_i32 = arith.constant 0 : i32
    %c0_i32_0 = arith.constant 0 : i32
    %c0_i32_1 = arith.constant 0 : i32
    return %c0_i32, %c0_i32_0 : i32, i32
  }
  func.func @transform_6(%arg0: i32) -> (i32, i32) {
    %c0_i32 = arith.constant 0 : i32
    %c0_i32_0 = arith.constant 0 : i32
    %c0_i32_1 = arith.constant 0 : i32
    return %c0_i32, %c0_i32_0 : i32, i32
  }
  func.func @transform_7(%arg0: i32) -> (i32, i32) {
    %c0_i32 = arith.constant 0 : i32
    %c0_i32_0 = arith.constant 0 : i32
    return %arg0, %c0_i32 : i32, i32
  }
}

</mosaic_0001>

<bundles_post_ra>
// kernel: bs_forward.1
= control target key start
LH: loop header
LB: loop body
LE: loop exit
PB: predicated region body
PF: predicated region fallthrough
CT: control target
= control target key end

     0   :  { %v462_v1 = vmov 0.0   ;;  %vm45_vm0 = vcmask 130048   ;;  %vm463_vm1 = vmmov 0   ;;  %s600_s0 = inlined_call_operand.vmem [shape: f32[8,16], index: 0, kind: input, shape index: {}]   ;;  %s601_s1 = inlined_call_operand.vmem [shape: bf16[16,128], index: 1, kind: input, shape index: {}]   ;;  %s602_s2 = inlined_call_operand.vmem [shape: f32[1,128], index: 2, kind: input, shape index: {}]   ;;  %s603_s3 = inlined_call_operand.vmem [shape: bf16[128,128], index: 3, kind: input, shape index: {}]   ;;  %s604_s4 = inlined_call_operand.vmem [shape: f32[1,128], index: 4, kind: input, shape index: {}]   ;;  %s605_s5 = inlined_call_operand.vmem [shape: bf16[128,8], index: 5, kind: input, shape index: {}]   ;;  %s606_s6 = inlined_call_operand.vmem [shape: f32[1,8], index: 6, kind: input, shape index: {}]   ;;  %s607_s7 = inlined_call_operand.hbm [shape: f32[8,8], index: 7, kind: output, shape index: {}]  }
   0x1   :  { %v421_v0 = vld [vmem:[%s601_s1] sm:$0xff]   ;;  %372 = vmatprep.subr.bf16.mxu0 %v462_v1  ;;  %378 = vmatprep.subr.bf16.mxu1 %v462_v1  ;;  %v423_v5 = vld [vmem:[%s603_s3 + $0x8] sm:$0xff]   ;;  %v424_v6 = vld [vmem:[%s603_s3 + $0x10] sm:$0xff]  }
   0x2   :  { %v28_v2 = vld [vmem:[%s600_s0] sm:$0xff]  ;;  %373 = vmatpush3.bf16.msra.mxu0 %v421_v0  ;;  %374 = vmatprep.mubr.msk.bf16.mxu0 %vm463_vm1, %v462_v1  ;;  %v425_v7 = vld [vmem:[%s603_s3 + $0x18] sm:$0xff]  }
   0x3   :  { %v422_v3 = vld [vmem:[%s603_s3] sm:$0xff]   ;;  %v29_v4 = vpack.c.bf16 %v28_v2, %v28_v2  ;;  %394 = vmatprep.mubr.msk.bf16.mxu1 %vm463_vm1, %v462_v1  ;;  %398 = vmatprep.subr.bf16.mxu0 %v462_v1 }
   0x4   :  { %379 = vmatpush3.bf16.msra.mxu1 %v422_v3 }
   0x5   :  { %380 = vmatprep.subr.bf16.mxu1 %v462_v1  ;;  %375 = vmatmul.mubr.msk.bf16.vlgmr.msra.gmra.mrb[0].mxu0 %vm45_vm0, %v29_v4 }
   0x6   :  { %414 = vmatprep.mubr.msk.bf16.mxu0 %vm463_vm1, %v462_v1 }
   0x8   :  { %381 = vmatpush3.bf16.msra.mxu1 %v423_v5 }
   0x9   :  { %382 = vmatprep.subr.bf16.mxu1 %v462_v1 }
   0xc   :  { %383 = vmatpush3.bf16.msra.mxu1 %v424_v6 }
   0xd   :  { %384 = vmatprep.subr.bf16.mxu1 %v462_v1 }
   0xe   :  { %12 = vsyncpa [#allocation3], 0  ;;  %v426_v8 = vld [vmem:[%s603_s3 + $0x20] sm:$0xff]   ;;  %v427_v9 = vld [vmem:[%s603_s3 + $0x28] sm:$0xff]   ;;  %s464_s14 = smov [#allocation2]   ;;  %vm315_vm2 = vcmask 64512  }
   0xf   :  { %v428_v10 = vld [vmem:[%s603_s3 + $0x30] sm:$0xff]   ;;  %v429_v11 = vld [vmem:[%s603_s3 + $0x38] sm:$0xff]   ;;  %v430_v12 = vld [vmem:[%s605_s5] sm:$0xff]   ;;  %s323_s15 = sshll.u32 %s464_s14, 4  ;;  %s324_s15 = int_to_ptr.vmem [resolvable:$true] %s323_s15 }
  0x10   :  { %385 = vmatpush3.bf16.msra.mxu1 %v425_v7  ;;  %399 = vmatpush3.bf16.msra.mxu0 %v430_v12  ;;  %v431_v13 = vld [vmem:[%s605_s5 + $0x8] sm:$0xff]   ;;  %v432_v14 = vld [vmem:[%s605_s5 + $0x10] sm:$0xff]   ;;  %v433_v15 = vld [vmem:[%s605_s5 + $0x18] sm:$0xff]   ;;  %p443_p1 = scmp.lt.s32.totalorder %s324_s15, %s324_s15 }
  0x11   :  { %386 = vmatprep.subr.bf16.mxu1 %v462_v1  ;;  %400 = vmatprep.subr.bf16.mxu0 %v462_v1  ;;  %v434_v16 = vld [vmem:[%s605_s5 + $0x20] sm:$0xff]   ;;  %v435_v17 = vld [vmem:[%s605_s5 + $0x28] sm:$0xff]   ;;  %v436_v26 = vld [vmem:[%s605_s5 + $0x30] sm:$0xff]  }
  0x12   :  { %v331_v18 = vld [vmem:[%s602_s2] ss:$0 sm:$0xff]  ;;  %v437_v27 = vld [vmem:[%s605_s5 + $0x38] sm:$0xff]  }
  0x13   :  { %v334_v28 = vld [vmem:[%s604_s4] ss:$0 sm:$0xff]  ;;  %s438_s4 = scalar_lea.vmem %s324_s15, 128 }
  0x14   :  { %387 = vmatpush3.bf16.msra.mxu1 %v426_v8  ;;  %401 = vmatpush3.bf16.msra.mxu0 %v431_v13  ;;  %v343_v36 = vld [vmem:[%s606_s6] ss:$0 sm:$0xff]  ;;  %p439_p0 = scmp.ne.s32.totalorder %s324_s15, %s438_s4  ;;  %p444_p2 = scmp.lt.s32.totalorder %s438_s4, %s438_s4 }
  0x15   :  { %388 = vmatprep.subr.bf16.mxu1 %v462_v1  ;;  %402 = vmatprep.subr.bf16.mxu0 %v462_v1 }
  0x16   :  { %p445_p3 = por %p444_p2, %p443_p1 }
  0x18   :  { %389 = vmatpush3.bf16.msra.mxu1 %v427_v9  ;;  %403 = vmatpush3.bf16.msra.mxu0 %v432_v14  ;;  %p446_p4 = pnand %p445_p3, %p439_p0 }
  0x19   :  { %390 = vmatprep.subr.bf16.mxu1 %v462_v1  ;;  %404 = vmatprep.subr.bf16.mxu0 %v462_v1 }
  0x1c   :  { %391 = vmatpush3.bf16.msra.mxu1 %v428_v10  ;;  %405 = vmatpush3.bf16.msra.mxu0 %v433_v15 }
  0x1d   :  { %392 = vmatprep.subr.bf16.mxu1 %v462_v1  ;;  %406 = vmatprep.subr.bf16.mxu0 %v462_v1 }
  0x20   :  { %393 = vmatpush3.bf16.msra.mxu1 %v429_v11  ;;  %407 = vmatpush3.bf16.msra.mxu0 %v434_v16 }
  0x21   :  { %408 = vmatprep.subr.bf16.mxu0 %v462_v1 }
  0x24   :  { %409 = vmatpush3.bf16.msra.mxu0 %v435_v17 }
  0x25   :  { %410 = vmatprep.subr.bf16.mxu0 %v462_v1 }
  0x28   :  { %411 = vmatpush3.bf16.msra.mxu0 %v436_v26 }
  0x29   :  { %412 = vmatprep.subr.bf16.mxu0 %v462_v1 }
  0x2c   :  { %413 = vmatpush3.bf16.msra.mxu0 %v437_v27 }
  0xd8   :  { %v83_v19 = vpop.f32.mrb[0].mxu0 }
  0xd9   :  { %v84_v20 = vadd.f32 %v331_v18, %v83_v19  ;;  %v376_v21 = vpop.f32.mrb[1].mxu0 }
  0xda   :  { %v86_v22 = vpop.f32.mrb[2].mxu0 }
  0xdb   :  { %v89_v23 = vmax.f32 %v84_v20, 0.0  ;;  %v377_v24 = vpop.f32.mrb[3].mxu0 }
  0xdd   :  { %v90_v25 = vpack.c.bf16 %v89_v23, %v89_v23 }
  0xdf   :  { %395 = vmatmul.mubr.bf16.vlgmr.msra.gmra.mrb[0].mxu1 %v90_v25 }
 0x1b2   :  { %v196_v29 = vpop.f32.mrb[0].mxu1 }
 0x1b3   :  { %v197_v30 = vadd.f32 %v334_v28, %v196_v29  ;;  %v396_v31 = vpop.f32.mrb[1].mxu1 }
 0x1b4   :  { %v199_v32 = vpop.f32.mrb[2].mxu1 }
 0x1b5   :  { %v202_v33 = vmax.f32 %v197_v30, 0.0  ;;  %v397_v34 = vpop.f32.mrb[3].mxu1 }
 0x1b7   :  { %v203_v35 = vpack.c.bf16 %v202_v33, %v202_v33 }
 0x1b9   :  { %415 = vmatmul.mubr.bf16.vlgmr.msra.gmra.mrb[4].mxu0 %v203_v35 }
 0x28c   :  { %v309_v37 = vpop.f32.mrb[4].mxu0 }
 0x28d   :  { %v310_v38 = vadd.f32 %v343_v36, %v309_v37  ;;  %v416_v39 = vpop.f32.mrb[5].mxu0 }
 0x28e   :  { %v312_v40 = vpop.f32.mrb[6].mxu0 }
 0x28f   :  { %v417_v41 = vpop.f32.mrb[7].mxu0  ;;  %316 = vst.msk [vmem:[#allocation2] sm:$0xff] %vm315_vm2, %v310_v38 }
 0x290   :  { %449 = shalt.err (!%p446_p4)
}
 0x291   :  { %s450_s6 = scalar_lea.hbm %s607_s7, 128 }
 0x292   :  { %p451_p5 = scmp.ne.s32.totalorder %s607_s7, %s450_s6  ;;  %p454_p6 = scmp.lt.u32.totalorder %s450_s6, %s607_s7 }
 0x294   :  { %p456_p7 = pnand %p454_p6, %p451_p5 }
 0x296   :  { %459 = shalt.err (!%p456_p7)
}
 0x297   :  { %326 = dma.vmem_to_hbm [thread:$0]  %s324_s15, 128, %s607_s7, [#allocation3]  }
 0x298   :  { %460 = dma.done.wait [#allocation3], 128  }
 0x299   :  { %461 = vsyncadd [#allocation3], 4294967168 }
 0x29a   :  { %330 = vsyncpa [#allocation3], 1 }

</bundles_post_ra>
